<compile_context>
chip_gen: v7x
topology: tpu7x:2x2x1
jax: 0.10.0
libtpu: 0.0.40
codegen_flags: <defaults>
</compile_context>

<pallas_src>
import functools

import jax
import jax.numpy as jnp
from jax.experimental import pallas as pl
from jax.experimental.pallas import tpu as pltpu


def _round_up(a, b):
    return ((a + b - 1) // b) * b


_NEG_BIG = -1e30          # mask value folded into the edge-logit bias
_M_INIT = -3.0e38         # finite "-inf" for the online-softmax running max

_VMEM_LIMIT_CACHE = None


def _vmem_limit():
    """Generation-aware VMEM cap (v5e/v6e: 128 MiB physical, v7x: 64 MiB)."""
    global _VMEM_LIMIT_CACHE
    if _VMEM_LIMIT_CACHE is None:
        cap = 64 << 20
        try:
            info = pltpu.get_tpu_info()
            cap = int(getattr(info, "vmem_capacity_bytes", cap) or cap)
        except Exception:
            pass
        _VMEM_LIMIT_CACHE = int(max(32 << 20, min(cap * 3 // 4, 96 << 20)))
    return _VMEM_LIMIT_CACHE


# ------------------------------ Pallas kernels ------------------------------ #

def _project_kernel(x_ref, w_ref, asrc_w_ref, adst_w_ref,
                    xph_ref, asrc_ref, adst_ref, *, H, C):
    """Once-per-layer projection (hoisted out of the attention loop).

    Single lane-dense GEMM xp = x @ W ([T, Fin] x [Fin, H*C]), then per-head
    views plus the attention source / destination terms.
    """
    xp = jnp.dot(x_ref[...], w_ref[...],
                 preferred_element_type=jnp.float32)              # [T, H*C]
    asrc_w = asrc_w_ref[...]                                      # [H, C]
    adst_w = adst_w_ref[...]                                      # [C, H]
    for h in range(H):
        xp_h = xp[:, h * C:(h + 1) * C]                           # [T, C] static
        xph_ref[h] = xp_h
        # a_src[h]: [1, T]  (sources on lanes -> broadcasts over dst sublanes)
        asrc_ref[h] = jax.lax.dot_general(
            asrc_w[h:h + 1, :], xp_h,
            dimension_numbers=(((1,), (1,)), ((), ())),
            preferred_element_type=jnp.float32)
        # a_dst[h]: [T, 1]  (destinations on sublanes)
        adst_ref[h] = jnp.dot(xp_h, adst_w[:, h:h + 1],
                              preferred_element_type=jnp.float32)


def _gat_attention_kernel(xph_ref, asrc_ref, adst_ref, elog_ref,
                          b_ref, gamma_ref, beta_ref, pmat_ref, out_ref,
                          m_scr, l_scr, acc_scr, *, H, C, apply_relu):
    """One (dst-tile, src-block) step of dense GAT attention.

    Flash-style online softmax over source blocks; fused bias + LayerNorm
    (+ReLU) + lane-dense placement epilogue on the last source block.
    elog already contains the adjacency mask as a -1e30 additive bias (bf16).
    """
    s = pl.program_id(1)

    @pl.when(s == 0)
    def _():
        m_scr[...] = jnp.full(m_scr.shape, _M_INIT, jnp.float32)
        l_scr[...] = jnp.zeros(l_scr.shape, jnp.float32)
        acc_scr[...] = jnp.zeros(acc_scr.shape, jnp.float32)

    logits = (adst_ref[...] + asrc_ref[...]
              + elog_ref[...].astype(jnp.float32))                # [H, Td, Ts]
    logits = jnp.where(logits > 0, logits, 0.2 * logits)          # LeakyReLU(0.2)

    m_cur = jnp.max(logits, axis=-1, keepdims=True)               # [H, Td, 1]
    m_new = jnp.maximum(m_scr[...], m_cur)
    scale = jnp.exp(m_scr[...] - m_new)
    p = jnp.exp(logits - m_new)                                   # masked -> 0

    l_scr[...] = scale * l_scr[...] + jnp.sum(p, axis=-1, keepdims=True)
    # bf16 x bf16 -> f32 accumulate on the MXU (the only matmul with large K)
    agg = jax.lax.dot_general(
        p.astype(jnp.bfloat16), xph_ref[...].astype(jnp.bfloat16),
        dimension_numbers=(((2,), (1,)), ((0,), (0,))),
        preferred_element_type=jnp.float32)                       # [H, Td, C]
    acc_scr[...] = scale * acc_scr[...] + agg
    m_scr[...] = m_new

    @pl.when(s == pl.num_programs(1) - 1)
    def _():
        HC = H * C
        inv_l = pl.reciprocal(l_scr[...], approx=True)            # EUP
        out_h = acc_scr[...] * inv_l + b_ref[...]                 # [H, Td, C]
        # LayerNorm over the real H*C features, computed head-major (no concat).
        s1 = jnp.sum(out_h, axis=2, keepdims=True)                # [H, Td, 1]
        mu = jnp.sum(s1, axis=0, keepdims=True) / HC              # [1, Td, 1]
        d = out_h - mu
        v1 = jnp.sum(d * d, axis=2, keepdims=True)
        var = jnp.sum(v1, axis=0, keepdims=True) / HC
        y = d * jax.lax.rsqrt(var + 1e-5) * gamma_ref[...] + beta_ref[...]
        if apply_relu:
            y = jnp.maximum(y, 0.0)
        # Lane-dense [Td, HC_pad] placement via a constant 0/1 matrix: small MXU
        # passes instead of XLU head-concat / masked sub-128-lane stores.
        pmat = pmat_ref[...]                                      # [H, C, HC_pad]
        out = jnp.dot(y[0], pmat[0], preferred_element_type=jnp.float32)
        for h in range(1, H):
            out = out + jnp.dot(y[h], pmat[h],
                                preferred_element_type=jnp.float32)
        out_ref[...] = out


def _pool_project_kernel(x_ref, masks_ref, gw_ref, gb_ref, fw_ref, fb_ref,
                         out_ref, *, G, Cpad):
    """GlobalAttention pooling over [monomer ; solvent] masks + final Linear."""
    x = x_ref[...]                                                # [Np, Cpad]
    gsum = jnp.sum(x * gw_ref[...], axis=1, keepdims=True)        # [Np, 1]
    gate = jax.nn.sigmoid(gsum + gb_ref[...])
    gate_row = gate[:, 0][None, :]                                # [1, Np]

    masks = masks_ref[...]                                        # [RG, Np]
    logits = jnp.where(masks > 0, gate_row, _NEG_BIG)
    m = jnp.max(logits, axis=1, keepdims=True)
    p = jnp.exp(logits - m)
    denom = jnp.sum(p, axis=1, keepdims=True)
    alpha = p * pl.reciprocal(denom, approx=True)                 # per-(graph,subset)
    pooled = jnp.dot(alpha, x, preferred_element_type=jnp.float32)  # [RG, Cpad]
    valid = jnp.sum(masks, axis=1, keepdims=True) > 0
    pooled = jnp.where(valid, pooled, 0.0)                        # empty subset -> 0

    fw = fw_ref[...]                                              # [2*Cpad, out]
    out = (jnp.dot(pooled[:G], fw[:Cpad], preferred_element_type=jnp.float32)
           + jnp.dot(pooled[G:2 * G], fw[Cpad:],
                     preferred_element_type=jnp.float32)
           + fb_ref[...])
    out_ref[...] = out


# ------------------------------ kernel wrappers ------------------------------ #

_VSPEC = pl.BlockSpec(memory_space=pltpu.MemorySpace.VMEM)


def _full1(a):
    nd = a.ndim
    return pl.BlockSpec(a.shape, lambda i: (0,) * nd)


def _full2(a):
    nd = a.ndim
    return pl.BlockSpec(a.shape, lambda i, s: (0,) * nd)


def project(x, w, asrc_w, adst_w, *, H, C, TILE):
    """xp = x @ W + per-head attention src/dst terms, once per layer."""
    Np, Fin = x.shape
    nt = Np // TILE
    kernel = functools.partial(_project_kernel, H=H, C=C)
    grid_spec = pltpu.PrefetchScalarGridSpec(
        num_scalar_prefetch=0,
        grid=(nt,),
        in_specs=[pl.BlockSpec((TILE, Fin), lambda i: (i, 0)),
                  _full1(w), _full1(asrc_w), _full1(adst_w)],
        out_specs=(pl.BlockSpec((H, TILE, C), lambda i: (0, i, 0)),
                   pl.BlockSpec((H, 1, TILE), lambda i: (0, 0, i)),
                   pl.BlockSpec((H, TILE, 1), lambda i: (0, i, 0))),
    )
    return pl.pallas_call(
        kernel,
        out_shape=(jax.ShapeDtypeStruct((H, Np, C), jnp.float32),
                   jax.ShapeDtypeStruct((H, 1, Np), jnp.float32),
                   jax.ShapeDtypeStruct((H, Np, 1), jnp.float32)),
        grid_spec=grid_spec,
        compiler_params=pltpu.CompilerParams(
            dimension_semantics=("parallel",),
            vmem_limit_bytes=_vmem_limit()),
    )(x, w, asrc_w, adst_w)


def gat_attention(xph, a_src, a_dst, elog, b, gamma, beta, pmat, *,
                  H, C, HC_pad, TILE_D, TILE_S, apply_relu):
    Np = xph.shape[1]
    nd, ns = Np // TILE_D, Np // TILE_S
    kernel = functools.partial(_gat_attention_kernel, H=H, C=C,
                               apply_relu=apply_relu)
    grid_spec = pltpu.PrefetchScalarGridSpec(
        num_scalar_prefetch=0,
        grid=(nd, ns),
        in_specs=[
            pl.BlockSpec((H, TILE_S, C), lambda i, s: (0, s, 0)),       # xph
            pl.BlockSpec((H, 1, TILE_S), lambda i, s: (0, 0, s)),       # a_src
            pl.BlockSpec((H, TILE_D, 1), lambda i, s: (0, i, 0)),       # a_dst
            pl.BlockSpec((H, TILE_D, TILE_S), lambda i, s: (0, i, s)),  # elog bf16
            _full2(b), _full2(gamma), _full2(beta), _full2(pmat),
        ],
        out_specs=pl.BlockSpec((TILE_D, HC_pad), lambda i, s: (i, 0)),
        scratch_shapes=[pltpu.VMEM((H, TILE_D, 1), jnp.float32),   # running max
                        pltpu.VMEM((H, TILE_D, 1), jnp.float32),   # running denom
                        pltpu.VMEM((H, TILE_D, C), jnp.float32)],  # running acc
    )
    return pl.pallas_call(
        kernel,
        out_shape=jax.ShapeDtypeStruct((Np, HC_pad), jnp.float32),
        grid_spec=grid_spec,
        compiler_params=pltpu.CompilerParams(
            dimension_semantics=("parallel", "arbitrary"),
            vmem_limit_bytes=_vmem_limit()),
    )(xph, a_src, a_dst, elog, b, gamma, beta, pmat)


def pool_project(x, masks, gw, gb, fw, fb, *, G, Cpad, output_dim):
    kernel = functools.partial(_pool_project_kernel, G=G, Cpad=Cpad)
    return pl.pallas_call(
        kernel,
        out_shape=jax.ShapeDtypeStruct((G, output_dim), jnp.float32),
        in_specs=[_VSPEC] * 6,
        out_specs=_VSPEC,
        compiler_params=pltpu.CompilerParams(vmem_limit_bytes=_vmem_limit()),
    )(x, masks, gw, gb, fw, fb)


# -------------------------------- model (glue) ------------------------------- #

def init_params(key, input_dim, hidden_dim, output_dim, num_heads, edge_dim=2):
    def gat(k, fin, Hh, C):
        ks = jax.random.split(k, 6)
        s = 1.0 / jnp.sqrt(jnp.float32(fin))
        return dict(
            w=jax.random.normal(ks[0], (fin, Hh * C), jnp.float32) * s,
            w_edge=jax.random.normal(ks[1], (edge_dim, Hh * C), jnp.float32) * 0.5,
            att_src=jax.random.normal(ks[2], (Hh, C), jnp.float32) * 0.5,
            att_dst=jax.random.normal(ks[3], (Hh, C), jnp.float32) * 0.5,
            att_edge=jax.random.normal(ks[4], (Hh, C), jnp.float32) * 0.5,
            b=jax.random.normal(ks[5], (1, Hh * C), jnp.float32) * 0.1,
            gamma=jnp.ones((1, Hh * C), jnp.float32),   # fused LayerNorm params
            beta=jnp.zeros((1, Hh * C), jnp.float32),
        )

    k1, k2, k3, k4, k5 = jax.random.split(key, 5)
    H, C = num_heads, hidden_dim
    return dict(
        conv1=gat(k1, input_dim + 2, H, C),
        conv2=gat(k2, H * C, H, C),
        conv3=gat(k3, H * C, 1, C),
        pool_gate=dict(
            w=jax.random.normal(k4, (hidden_dim, 1), jnp.float32) * 0.5,
            b=jnp.zeros((1, 1), jnp.float32)),
        final=dict(
            w=jax.random.normal(k5, (2 * hidden_dim, output_dim), jnp.float32) * 0.3,
            b=jnp.zeros((1, output_dim), jnp.float32)),
    )


def forward(batch, params, *, hidden_dim, output_dim, num_heads):
    x = batch["node_features"].astype(jnp.float32)              # [N, input_dim]
    edge_index = batch["edge_index"]                            # [2, E] int32
    edge_attr = batch["edge_attr"].astype(jnp.float32)          # [E, 2]
    mapping = batch["polymer_mapping"]                          # [N] int32
    polymer_feats = batch["polymer_feats"].astype(jnp.float32)  # [G, F_p]

    N = x.shape[0]
    G = polymer_feats.shape[0]
    edim = edge_attr.shape[1]
    H, C = num_heads, hidden_dim
    HC = H * C
    HC_pad = _round_up(HC, 128)
    C_pad = _round_up(C, 128)

    # tile geometry: dst tiles of up to 128 rows; source blocks up to 1024
    TILE_D = min(128, _round_up(N, 8))
    Np = _round_up(N, TILE_D)
    TILE_S = TILE_D
    for cand in (1024, 512, 256):
        if Np % cand == 0:
            TILE_S = cand
            break

    # ---- solvent tags (last node of each consecutive polymer run) + density ----
    tags = jnp.concatenate([
        (mapping[1:] != mapping[:-1]).astype(jnp.float32),
        jnp.ones((1,), jnp.float32)])
    density_per_node = polymer_feats[:, 0][mapping]
    x_aug = jnp.concatenate([x, tags[:, None], density_per_node[:, None]], axis=-1)
    x0 = jnp.pad(x_aug, ((0, Np - N), (0, 0)))          # zero rows for padded nodes

    # ---- self loops (edge_attr fill_value='mean') + masked dense edge logits ----
    src, dst = edge_index[0], edge_index[1]
    sums = jnp.zeros((N, edim), jnp.float32).at[dst].add(edge_attr)
    cnts = jnp.zeros((N,), jnp.float32).at[dst].add(1.0)
    loop_attr = sums / jnp.maximum(cnts, 1.0)[:, None]
    loop = jnp.arange(N, dtype=src.dtype)
    src_f = jnp.concatenate([src, loop])
    dst_f = jnp.concatenate([dst, loop])
    ea_f = jnp.concatenate([edge_attr, loop_attr], axis=0)      # [E+N, edim]

    def edge_bias(p, Hh):
        # alpha_edge(e)[h] = <lin_edge(edge_attr_e).reshape(Hh,C)[h], att_edge[h]>
        A = (p["w_edge"].reshape(edim, Hh, C) * p["att_edge"][None]).sum(-1)
        per_edge = ea_f @ A                                     # [E+N, Hh]
        bias = jnp.full((Hh, Np, Np), _NEG_BIG, jnp.float32)    # mask folded in
        bias = bias.at[:, dst_f, src_f].set(per_edge.T)
        return bias.astype(jnp.bfloat16)    # bf16: halves the dominant HBM stream

    def run_layer(p, x_in, Hh, apply_relu, out_pad):
        fin = x_in.shape[1]
        w = p["w"]
        if w.shape[0] < fin:                # zero-row pad for lane-padded inputs
            w = jnp.pad(w, ((0, fin - w.shape[0]), (0, 0)))
        xph, a_src, a_dst = project(x_in, w, p["att_src"], p["att_dst"].T,
                                    H=Hh, C=C, TILE=TILE_D)
        b_r = p["b"].reshape(Hh, C)[:, None, :]
        g_r = p["gamma"].reshape(Hh, C)[:, None, :]
        be_r = p["beta"].reshape(Hh, C)[:, None, :]
        pmat = jnp.eye(Hh * C, out_pad, dtype=jnp.float32).reshape(Hh, C, out_pad)
        return gat_attention(xph, a_src, a_dst, edge_bias(p, Hh),
                             b_r, g_r, be_r, pmat,
                             H=Hh, C=C, HC_pad=out_pad,
                             TILE_D=TILE_D, TILE_S=TILE_S, apply_relu=apply_relu)

    h1 = run_layer(params["conv1"], x0, H, True, HC_pad)
    h2 = run_layer(params["conv2"], h1, H, True, HC_pad)
    h3 = run_layer(params["conv3"], h2, 1, False, C_pad)

    # ---- pooling masks: [monomer ; solvent] stacked, rows padded to 8-multiple ----
    one_hot = (mapping[None, :] == jnp.arange(G)[:, None]).astype(jnp.float32)
    mono = one_hot * (1.0 - tags)[None, :]
    solv = one_hot * tags[None, :]
    RG = _round_up(2 * G, 8)
    masks = jnp.concatenate([mono, solv], axis=0)
    masks = jnp.pad(masks, ((0, RG - 2 * G), (0, Np - N)))

    gw = jnp.pad(params["pool_gate"]["w"].T, ((0, 0), (0, C_pad - C)))   # [1, C_pad]
    fw = params["final"]["w"]                                            # [2C, out]
    fw_pad = jnp.zeros((2 * C_pad, output_dim), jnp.float32)
    fw_pad = fw_pad.at[:C].set(fw[:C]).at[C_pad:C_pad + C].set(fw[C:])

    return pool_project(h3, masks, gw, params["pool_gate"]["b"], fw_pad,
                        params["final"]["b"], G=G, Cpad=C_pad,
                        output_dim=output_dim)


# ----------------------------------- main ------------------------------------ #

if __name__ == "__main__":
    input_dim, hidden_dim, output_dim, num_heads = 4, 8, 3, 4

    key = jax.random.PRNGKey(0)
    kx, ke, kp, kparams = jax.random.split(key, 4)

    # 2 graphs: 5 nodes + 7 nodes = 12 nodes; last node of each graph is the solvent
    sizes = [5, 7]
    N = sum(sizes)
    G = len(sizes)
    polymer_mapping = jnp.array(sum([[g] * s for g, s in enumerate(sizes)], []),
                                dtype=jnp.int32)

    # bidirectional chain edges within each graph
    src_list, dst_list = [], []
    offset = 0
    for s in sizes:
        for i in range(s - 1):
            a, b = offset + i, offset + i + 1
            src_list += [a, b]
            dst_list += [b, a]
        offset += s
    edge_index = jnp.array([src_list, dst_list], dtype=jnp.int32)   # [2, 20]
    E = edge_index.shape[1]

    batch = dict(
        node_features=jax.random.normal(kx, (N, input_dim), jnp.float32),
        edge_index=edge_index,
        edge_attr=jax.random.normal(ke, (E, 2), jnp.float32),
        polymer_mapping=polymer_mapping,
        polymer_feats=jax.random.normal(kp, (G, 3), jnp.float32),
    )

    params = init_params(kparams, input_dim, hidden_dim, output_dim, num_heads)

    out = forward(batch, params, hidden_dim=hidden_dim,
                  output_dim=output_dim, num_heads=num_heads)
    out = jax.block_until_ready(out)

    assert out.shape == (G, output_dim)
    assert bool(jnp.all(jnp.isfinite(out)))
    print("KERNEL_OK")
</pallas_src>

<mosaic_0001>
module attributes {stable_mosaic.version = 11 : i64} {
  func.func @_project_kernel(%arg0: i32, %arg1: memref<16x6xf32, #tpu.memory_space<vmem>>, %arg2: memref<6x32xf32, #tpu.memory_space<vmem>>, %arg3: memref<4x8xf32, #tpu.memory_space<vmem>>, %arg4: memref<8x4xf32, #tpu.memory_space<vmem>>, %arg5: memref<4x16x8xf32, #tpu.memory_space<vmem>>, %arg6: memref<4x1x16xf32, #tpu.memory_space<vmem>>, %arg7: memref<4x16x1xf32, #tpu.memory_space<vmem>>) attributes {dimension_semantics = [#tpu.dimension_semantics<parallel>], iteration_bounds = array<i64: 1>, scalar_prefetch = 0 : i64, scratch_operands = 0 : i64, tpu.core_type = #tpu.core_type<tc>, window_params = [{transform_indices = @transform_0, window_bounds = array<i64: 16, 6>}, {pipeline_mode = #tpu.pipeline_mode<synchronous>, transform_indices = @transform_1, window_bounds = array<i64: 6, 32>}, {pipeline_mode = #tpu.pipeline_mode<synchronous>, transform_indices = @transform_2, window_bounds = array<i64: 4, 8>}, {pipeline_mode = #tpu.pipeline_mode<synchronous>, transform_indices = @transform_3, window_bounds = array<i64: 8, 4>}, {transform_indices = @transform_4, window_bounds = array<i64: 4, 16, 8>}, {transform_indices = @transform_5, window_bounds = array<i64: 4, 1, 16>}, {transform_indices = @transform_6, window_bounds = array<i64: 4, 16, 1>}]} {
    %c0 = arith.constant 0 : index
    %c0_0 = arith.constant 0 : index
    %0 = vector.load %arg1[%c0, %c0_0] : memref<16x6xf32, #tpu.memory_space<vmem>>, vector<16x6xf32>
    %c0_1 = arith.constant 0 : index
    %c0_2 = arith.constant 0 : index
    %1 = vector.load %arg2[%c0_1, %c0_2] : memref<6x32xf32, #tpu.memory_space<vmem>>, vector<6x32xf32>
    %cst = arith.constant dense<0.000000e+00> : vector<16x32xf32>
    %2 = tpu.matmul %0, %1, %cst {dimension_numbers = #tpu.dot_dimension_numbers<[1], [0], [0], [1], [0, 0, 1, 1], [], []>} : vector<16x6xf32>, vector<6x32xf32>, vector<16x32xf32> -> vector<16x32xf32>
    %c0_3 = arith.constant 0 : index
    %c0_4 = arith.constant 0 : index
    %3 = vector.load %arg3[%c0_3, %c0_4] : memref<4x8xf32, #tpu.memory_space<vmem>>, vector<4x8xf32>
    %c0_5 = arith.constant 0 : index
    %c0_6 = arith.constant 0 : index
    %4 = vector.load %arg4[%c0_5, %c0_6] : memref<8x4xf32, #tpu.memory_space<vmem>>, vector<8x4xf32>
    %5 = vector.extract_strided_slice %2 {offsets = [0, 0], sizes = [16, 8], strides = [1, 1]} : vector<16x32xf32> to vector<16x8xf32>
    %c0_7 = arith.constant 0 : index
    %c0_8 = arith.constant 0 : index
    %c0_9 = arith.constant 0 : index
    %6 = vector.load %arg5[%c0_7, %c0_8, %c0_9] : memref<4x16x8xf32, #tpu.memory_space<vmem>>, vector<1x16x8xf32>
    %7 = vector.shape_cast %6 : vector<1x16x8xf32> to vector<16x8xf32>
    %8 = vector.shape_cast %5 : vector<16x8xf32> to vector<1x16x8xf32>
    tpu.vector_store %arg5[%c0_7, %c0_8, %c0_9], %8 {strides = array<i32>} : memref<4x16x8xf32, #tpu.memory_space<vmem>>, vector<1x16x8xf32>,
    %9 = vector.extract_strided_slice %3 {offsets = [0, 0], sizes = [1, 8], strides = [1, 1]} : vector<4x8xf32> to vector<1x8xf32>
    %cst_10 = arith.constant dense<0.000000e+00> : vector<1x16xf32>
    %10 = tpu.matmul %9, %5, %cst_10 {dimension_numbers = #tpu.dot_dimension_numbers<[1], [1], [0], [0], [0, 0, 1, 0], [], []>} : vector<1x8xf32>, vector<16x8xf32>, vector<1x16xf32> -> vector<1x16xf32>
    %c0_11 = arith.constant 0 : index
    %c0_12 = arith.constant 0 : index
    %c0_13 = arith.constant 0 : index
    %11 = vector.load %arg6[%c0_11, %c0_12, %c0_13] : memref<4x1x16xf32, #tpu.memory_space<vmem>>, vector<1x1x16xf32>
    %12 = vector.shape_cast %11 : vector<1x1x16xf32> to vector<1x16xf32>
    %13 = vector.shape_cast %10 : vector<1x16xf32> to vector<1x1x16xf32>
    tpu.vector_store %arg6[%c0_11, %c0_12, %c0_13], %13 {strides = array<i32>} : memref<4x1x16xf32, #tpu.memory_space<vmem>>, vector<1x1x16xf32>,
    %14 = vector.extract_strided_slice %4 {offsets = [0, 0], sizes = [8, 1], strides = [1, 1]} : vector<8x4xf32> to vector<8x1xf32>
    %cst_14 = arith.constant dense<0.000000e+00> : vector<16x1xf32>
    %15 = tpu.matmul %5, %14, %cst_14 {dimension_numbers = #tpu.dot_dimension_numbers<[1], [0], [0], [1], [0, 0, 1, 1], [], []>} : vector<16x8xf32>, vector<8x1xf32>, vector<16x1xf32> -> vector<16x1xf32>
    %c0_15 = arith.constant 0 : index
    %c0_16 = arith.constant 0 : index
    %c0_17 = arith.constant 0 : index
    %16 = vector.load %arg7[%c0_15, %c0_16, %c0_17] : memref<4x16x1xf32, #tpu.memory_space<vmem>>, vector<1x16x1xf32>
    %17 = vector.shape_cast %16 : vector<1x16x1xf32> to vector<16x1xf32>
    %18 = vector.shape_cast %15 : vector<16x1xf32> to vector<1x16x1xf32>
    tpu.vector_store %arg7[%c0_15, %c0_16, %c0_17], %18 {strides = array<i32>} : memref<4x16x1xf32, #tpu.memory_space<vmem>>, vector<1x16x1xf32>,
    %19 = vector.extract_strided_slice %2 {offsets = [0, 8], sizes = [16, 8], strides = [1, 1]} : vector<16x32xf32> to vector<16x8xf32>
    %c1 = arith.constant 1 : index
    %c0_18 = arith.constant 0 : index
    %c0_19 = arith.constant 0 : index
    %20 = vector.load %arg5[%c1, %c0_18, %c0_19] : memref<4x16x8xf32, #tpu.memory_space<vmem>>, vector<1x16x8xf32>
    %21 = vector.shape_cast %20 : vector<1x16x8xf32> to vector<16x8xf32>
    %22 = vector.shape_cast %19 : vector<16x8xf32> to vector<1x16x8xf32>
    tpu.vector_store %arg5[%c1, %c0_18, %c0_19], %22 {strides = array<i32>} : memref<4x16x8xf32, #tpu.memory_space<vmem>>, vector<1x16x8xf32>,
    %23 = vector.extract_strided_slice %3 {offsets = [1, 0], sizes = [1, 8], strides = [1, 1]} : vector<4x8xf32> to vector<1x8xf32>
    %cst_20 = arith.constant dense<0.000000e+00> : vector<1x16xf32>
    %24 = tpu.matmul %23, %19, %cst_20 {dimension_numbers = #tpu.dot_dimension_numbers<[1], [1], [0], [0], [0, 0, 1, 0], [], []>} : vector<1x8xf32>, vector<16x8xf32>, vector<1x16xf32> -> vector<1x16xf32>
    %c1_21 = arith.constant 1 : index
    %c0_22 = arith.constant 0 : index
    %c0_23 = arith.constant 0 : index
    %25 = vector.load %arg6[%c1_21, %c0_22, %c0_23] : memref<4x1x16xf32, #tpu.memory_space<vmem>>, vector<1x1x16xf32>
    %26 = vector.shape_cast %25 : vector<1x1x16xf32> to vector<1x16xf32>
    %27 = vector.shape_cast %24 : vector<1x16xf32> to vector<1x1x16xf32>
    tpu.vector_store %arg6[%c1_21, %c0_22, %c0_23], %27 {strides = array<i32>} : memref<4x1x16xf32, #tpu.memory_space<vmem>>, vector<1x1x16xf32>,
    %28 = vector.extract_strided_slice %4 {offsets = [0, 1], sizes = [8, 1], strides = [1, 1]} : vector<8x4xf32> to vector<8x1xf32>
    %cst_24 = arith.constant dense<0.000000e+00> : vector<16x1xf32>
    %29 = tpu.matmul %19, %28, %cst_24 {dimension_numbers = #tpu.dot_dimension_numbers<[1], [0], [0], [1], [0, 0, 1, 1], [], []>} : vector<16x8xf32>, vector<8x1xf32>, vector<16x1xf32> -> vector<16x1xf32>
    %c1_25 = arith.constant 1 : index
    %c0_26 = arith.constant 0 : index
    %c0_27 = arith.constant 0 : index
    %30 = vector.load %arg7[%c1_25, %c0_26, %c0_27] : memref<4x16x1xf32, #tpu.memory_space<vmem>>, vector<1x16x1xf32>
    %31 = vector.shape_cast %30 : vector<1x16x1xf32> to vector<16x1xf32>
    %32 = vector.shape_cast %29 : vector<16x1xf32> to vector<1x16x1xf32>
    tpu.vector_store %arg7[%c1_25, %c0_26, %c0_27], %32 {strides = array<i32>} : memref<4x16x1xf32, #tpu.memory_space<vmem>>, vector<1x16x1xf32>,
    %33 = vector.extract_strided_slice %2 {offsets = [0, 16], sizes = [16, 8], strides = [1, 1]} : vector<16x32xf32> to vector<16x8xf32>
    %c2 = arith.constant 2 : index
    %c0_28 = arith.constant 0 : index
    %c0_29 = arith.constant 0 : index
    %34 = vector.load %arg5[%c2, %c0_28, %c0_29] : memref<4x16x8xf32, #tpu.memory_space<vmem>>, vector<1x16x8xf32>
    %35 = vector.shape_cast %34 : vector<1x16x8xf32> to vector<16x8xf32>
    %36 = vector.shape_cast %33 : vector<16x8xf32> to vector<1x16x8xf32>
    tpu.vector_store %arg5[%c2, %c0_28, %c0_29], %36 {strides = array<i32>} : memref<4x16x8xf32, #tpu.memory_space<vmem>>, vector<1x16x8xf32>,
    %37 = vector.extract_strided_slice %3 {offsets = [2, 0], sizes = [1, 8], strides = [1, 1]} : vector<4x8xf32> to vector<1x8xf32>
    %cst_30 = arith.constant dense<0.000000e+00> : vector<1x16xf32>
    %38 = tpu.matmul %37, %33, %cst_30 {dimension_numbers = #tpu.dot_dimension_numbers<[1], [1], [0], [0], [0, 0, 1, 0], [], []>} : vector<1x8xf32>, vector<16x8xf32>, vector<1x16xf32> -> vector<1x16xf32>
    %c2_31 = arith.constant 2 : index
    %c0_32 = arith.constant 0 : index
    %c0_33 = arith.constant 0 : index
    %39 = vector.load %arg6[%c2_31, %c0_32, %c0_33] : memref<4x1x16xf32, #tpu.memory_space<vmem>>, vector<1x1x16xf32>
    %40 = vector.shape_cast %39 : vector<1x1x16xf32> to vector<1x16xf32>
    %41 = vector.shape_cast %38 : vector<1x16xf32> to vector<1x1x16xf32>
    tpu.vector_store %arg6[%c2_31, %c0_32, %c0_33], %41 {strides = array<i32>} : memref<4x1x16xf32, #tpu.memory_space<vmem>>, vector<1x1x16xf32>,
    %42 = vector.extract_strided_slice %4 {offsets = [0, 2], sizes = [8, 1], strides = [1, 1]} : vector<8x4xf32> to vector<8x1xf32>
    %cst_34 = arith.constant dense<0.000000e+00> : vector<16x1xf32>
    %43 = tpu.matmul %33, %42, %cst_34 {dimension_numbers = #tpu.dot_dimension_numbers<[1], [0], [0], [1], [0, 0, 1, 1], [], []>} : vector<16x8xf32>, vector<8x1xf32>, vector<16x1xf32> -> vector<16x1xf32>
    %c2_35 = arith.constant 2 : index
    %c0_36 = arith.constant 0 : index
    %c0_37 = arith.constant 0 : index
    %44 = vector.load %arg7[%c2_35, %c0_36, %c0_37] : memref<4x16x1xf32, #tpu.memory_space<vmem>>, vector<1x16x1xf32>
    %45 = vector.shape_cast %44 : vector<1x16x1xf32> to vector<16x1xf32>
    %46 = vector.shape_cast %43 : vector<16x1xf32> to vector<1x16x1xf32>
    tpu.vector_store %arg7[%c2_35, %c0_36, %c0_37], %46 {strides = array<i32>} : memref<4x16x1xf32, #tpu.memory_space<vmem>>, vector<1x16x1xf32>,
    %47 = vector.extract_strided_slice %2 {offsets = [0, 24], sizes = [16, 8], strides = [1, 1]} : vector<16x32xf32> to vector<16x8xf32>
    %c3 = arith.constant 3 : index
    %c0_38 = arith.constant 0 : index
    %c0_39 = arith.constant 0 : index
    %48 = vector.load %arg5[%c3, %c0_38, %c0_39] : memref<4x16x8xf32, #tpu.memory_space<vmem>>, vector<1x16x8xf32>
    %49 = vector.shape_cast %48 : vector<1x16x8xf32> to vector<16x8xf32>
    %50 = vector.shape_cast %47 : vector<16x8xf32> to vector<1x16x8xf32>
    tpu.vector_store %arg5[%c3, %c0_38, %c0_39], %50 {strides = array<i32>} : memref<4x16x8xf32, #tpu.memory_space<vmem>>, vector<1x16x8xf32>,
    %51 = vector.extract_strided_slice %3 {offsets = [3, 0], sizes = [1, 8], strides = [1, 1]} : vector<4x8xf32> to vector<1x8xf32>
    %cst_40 = arith.constant dense<0.000000e+00> : vector<1x16xf32>
    %52 = tpu.matmul %51, %47, %cst_40 {dimension_numbers = #tpu.dot_dimension_numbers<[1], [1], [0], [0], [0, 0, 1, 0], [], []>} : vector<1x8xf32>, vector<16x8xf32>, vector<1x16xf32> -> vector<1x16xf32>
    %c3_41 = arith.constant 3 : index
    %c0_42 = arith.constant 0 : index
    %c0_43 = arith.constant 0 : index
    %53 = vector.load %arg6[%c3_41, %c0_42, %c0_43] : memref<4x1x16xf32, #tpu.memory_space<vmem>>, vector<1x1x16xf32>
    %54 = vector.shape_cast %53 : vector<1x1x16xf32> to vector<1x16xf32>
    %55 = vector.shape_cast %52 : vector<1x16xf32> to vector<1x1x16xf32>
    tpu.vector_store %arg6[%c3_41, %c0_42, %c0_43], %55 {strides = array<i32>} : memref<4x1x16xf32, #tpu.memory_space<vmem>>, vector<1x1x16xf32>,
    %56 = vector.extract_strided_slice %4 {offsets = [0, 3], sizes = [8, 1], strides = [1, 1]} : vector<8x4xf32> to vector<8x1xf32>
    %cst_44 = arith.constant dense<0.000000e+00> : vector<16x1xf32>
    %57 = tpu.matmul %47, %56, %cst_44 {dimension_numbers = #tpu.dot_dimension_numbers<[1], [0], [0], [1], [0, 0, 1, 1], [], []>} : vector<16x8xf32>, vector<8x1xf32>, vector<16x1xf32> -> vector<16x1xf32>
    %c3_45 = arith.constant 3 : index
    %c0_46 = arith.constant 0 : index
    %c0_47 = arith.constant 0 : index
    %58 = vector.load %arg7[%c3_45, %c0_46, %c0_47] : memref<4x16x1xf32, #tpu.memory_space<vmem>>, vector<1x16x1xf32>
    %59 = vector.shape_cast %58 : vector<1x16x1xf32> to vector<16x1xf32>
    %60 = vector.shape_cast %57 : vector<16x1xf32> to vector<1x16x1xf32>
    tpu.vector_store %arg7[%c3_45, %c0_46, %c0_47], %60 {strides = array<i32>} : memref<4x16x1xf32, #tpu.memory_space<vmem>>, vector<1x16x1xf32>,
    return
  }
  func.func @transform_0(%arg0: i32) -> (i32, i32) {
    %c0_i32 = arith.constant 0 : i32
    %c0_i32_0 = arith.constant 0 : i32
    return %arg0, %c0_i32 : i32, i32
  }
  func.func @transform_1(%arg0: i32) -> (i32, i32) {
    %c0_i32 = arith.constant 0 : i32
    %c0_i32_0 = arith.constant 0 : i32
    %c0_i32_1 = arith.constant 0 : i32
    return %c0_i32, %c0_i32_0 : i32, i32
  }
  func.func @transform_2(%arg0: i32) -> (i32, i32) {
    %c0_i32 = arith.constant 0 : i32
    %c0_i32_0 = arith.constant 0 : i32
    %c0_i32_1 = arith.constant 0 : i32
    return %c0_i32, %c0_i32_0 : i32, i32
  }
  func.func @transform_3(%arg0: i32) -> (i32, i32) {
    %c0_i32 = arith.constant 0 : i32
    %c0_i32_0 = arith.constant 0 : i32
    %c0_i32_1 = arith.constant 0 : i32
    return %c0_i32, %c0_i32_0 : i32, i32
  }
  func.func @transform_4(%arg0: i32) -> (i32, i32, i32) {
    %c0_i32 = arith.constant 0 : i32
    %c0_i32_0 = arith.constant 0 : i32
    %c0_i32_1 = arith.constant 0 : i32
    return %c0_i32, %arg0, %c0_i32_0 : i32, i32, i32
  }
  func.func @transform_5(%arg0: i32) -> (i32, i32, i32) {
    %c0_i32 = arith.constant 0 : i32
    %c0_i32_0 = arith.constant 0 : i32
    %c0_i32_1 = arith.constant 0 : i32
    return %c0_i32, %c0_i32_0, %arg0 : i32, i32, i32
  }
  func.func @transform_6(%arg0: i32) -> (i32, i32, i32) {
    %c0_i32 = arith.constant 0 : i32
    %c0_i32_0 = arith.constant 0 : i32
    %c0_i32_1 = arith.constant 0 : i32
    return %c0_i32, %arg0, %c0_i32_0 : i32, i32, i32
  }
}

</mosaic_0001>

<bundles_post_ra>
// kernel: tpu_custom_call.1
= control target key start
LH: loop header
LB: loop body
LE: loop exit
PB: predicated region body
PF: predicated region fallthrough
CT: control target
= control target key end

     0   :  { %vm31_vm0 = vcmask 1045504   ;;  %vm24_vm1 = vcmask 48128   ;;  %s1149_s0 = inlined_call_operand.vmem [shape: f32[16,6], index: 0, kind: input, shape index: {}]   ;;  %s1150_s1 = inlined_call_operand.vmem [shape: f32[6,32], index: 1, kind: input, shape index: {}]   ;;  %s1151_s2 = inlined_call_operand.vmem [shape: f32[4,8], index: 2, kind: input, shape index: {}]   ;;  %s1152_s3 = inlined_call_operand.vmem [shape: f32[8,4], index: 3, kind: input, shape index: {}]   ;;  %s1153_s4 = inlined_call_operand.vmem [shape: f32[4,16,8], index: 4, kind: output, shape index: {0}]   ;;  %s1154_s5 = inlined_call_operand.hbm [shape: f32[4,1,16], index: 5, kind: output, shape index: {1}]   ;;  %s1155_s6 = inlined_call_operand.vmem [shape: f32[4,16,1], index: 6, kind: output, shape index: {2}]  }
   0x1   :  { %v23_v0 = vld [vmem:[%s1150_s1] sm:$0x3f]  ;;  %v22_v2 = vld [vmem:[%s1149_s0 + $0x8] sm:$0xff] }
   0x2   :  { %v21_v1 = vld [vmem:[%s1149_s0] sm:$0xff]  ;;  %868 = vmatprep.subr.msk.mxu0 %vm31_vm0, %v23_v0 }
   0x3   :  { %870 = vmatprep.mubr.msk.f32.mxu0 %vm24_vm1, %v21_v1  ;;  %v111_v3 = vld [vmem:[%s1152_s3] sm:$0xff] }
   0x4   :  { %12 = vsyncpa [#allocation3], 0  ;;  %869 = vmatpush3.msk.msra.mxu0 %vm31_vm0, %v23_v0  ;;  %s973_s29 = smov 127   ;;  %s974_s1 = smov 126   ;;  %v975_v4 = vmov 0.0|0.0   ;;  %vm976_vm2 = vmmov 0  }
   0x5   :  { %363 = vrot.lane.b32.xlu1 %v111_v3, %s973_s29  ;;  %871 = vmatmul.mubr.msk.f32.vlgmr.msra.gmra.mrb[0].mxu0 %vm24_vm1, %v22_v2  ;;  %v977_v5 = vmov 0.0   ;;  %vm112_vm3 = vcmask 64512   ;;  %s978_s30 = smov 112   ;;  %s979_s9 = smov 120   ;;  %v110_v11 = vld [vmem:[%s1151_s2] sm:$0xf] }
   0x6   :  { %880 = vmatprep.subr.mxu0 %v111_v3  ;;  %921 = vmatprep.subr.bf16.mxu1 %v975_v4  ;;  %vm1040_vm4 = vmpackc.low %vm112_vm3, %vm112_vm3  ;;  %s980_s10 = smov 104   ;;  %s981_s13 = smov 125   ;;  %v283_v20 = vrot.slane %v110_v11, 1  ;;  %v453_v22 = vrot.slane %v110_v11, 2  ;;  %v622_v25 = vrot.slane %v110_v11, 3  ;;  %vm271_vm5 = vcmask 7168  }
   0x7   :  { %881 = vmatpush3.msra.mxu0 %v111_v3  ;;  %877 = vmatprep.mubr.msk.f32.mxu1 %vm976_vm2, %v977_v5  ;;  %vm194_vm6 = vcmask 122880  }
   0x8   :  { %925 = vmatprep.subr.bf16.mxu0 %v975_v4 }
   0x9   :  { %532 = vrot.lane.b32.xlu1 %v111_v3, %s974_s1 }
  0x77   :  { %v364_v10 = vpop.permute.xlu1 %363 }
  0x7b   :  { %v533_v12 = vpop.permute.xlu1 %532 }
  0xd8   :  { %v872_v6 = vpop.f32.mrb[0].mxu0 }
  0xd9   :  { %114 = vst.msk [vmem:[%s1153_s4 + $0x8] sm:$0xff] %vm112_vm3, %v872_v6  ;;  %446 = vrot.lane.b32.xlu1 %v872_v6, %s978_s30  ;;  %v101_v7 = vpop.f32.mrb[1].mxu0 }
  0xda   :  { %113 = vst.msk [vmem:[%s1153_s4] sm:$0xff] %vm112_vm3, %v101_v7  ;;  %274 = vrot.lane.b32.xlu0 %v101_v7, %s979_s9  ;;  %882 = vmatprep.mubr.msk.f32.mxu0 %vm112_vm3, %v101_v7  ;;  %v922_v9 = vpack.c.bf16 %v872_v6, %v101_v7 }
  0xdb   :  { %883 = vmatmul.mubr.msk.f32.vlgmr.msra.gmra.mrb[2].mxu0 %vm112_vm3, %v872_v6 }
  0xdc   :  { %924 = vmatpush3.bf16.xpose.msk.msra.mxu1 %vm1040_vm4, %v922_v9  ;;  %889 = vmatprep.mubr.msk.f32.mxu0 %vm976_vm2, %v977_v5 }
  0xdd   :  { %615 = vrot.lane.b32.xlu1 %v872_v6, %s980_s10  ;;  %892 = vmatprep.subr.mxu1 %v364_v10 }
  0xde   :  { %276 = vrot.lane.b32.xlu0 %v872_v6, %s979_s9 }
  0xe2   :  { %444 = vrot.lane.b32.xlu0 %v101_v7, %s978_s30 }
  0xe3   :  { %878 = vmatmul.mubr.msk.f32.vlgmr.msra.gmra.mrb[0].mxu1 %vm112_vm3, %v110_v11 }
  0xe4   :  { %893 = vmatpush3.msra.mxu1 %v364_v10 }
  0xe5   :  { %929 = vmatprep.subr.bf16.mxu1 %v975_v4 }
  0xe6   :  { %613 = vrot.lane.b32.xlu0 %v101_v7, %s980_s10 }
  0xea   :  { %701 = vrot.lane.b32.xlu0 %v111_v3, %s981_s13  ;;  %s982_s13 = smov [#allocation2]  }
  0xeb   :  { %s789_s14 = sshll.u32 %s982_s13, 4  ;;  %s790_s14 = int_to_ptr.vmem [resolvable:$true] %s789_s14 }
  0xec   :  { %s949_s15 = scalar_lea.vmem %s790_s14, 64  ;;  %p954_p1 = scmp.lt.s32.totalorder %s790_s14, %s790_s14 }
  0xed   :  { %p950_p0 = scmp.ne.s32.totalorder %s790_s14, %s949_s15  ;;  %p955_p2 = scmp.lt.s32.totalorder %s949_s15, %s949_s15 }
  0xef   :  { %p956_p3 = por %p955_p2, %p954_p1 }
  0xf1   :  { %p957_p4 = pnand %p956_p3, %p950_p0 }
 0x14b   :  { %v447_v13 = vpop.permute.xlu1 %446 }
 0x14c   :  { %824 = vst.msk [vmem:[%s1153_s4 + $0x28] sm:$0xff] %vm112_vm3, %v447_v13  ;;  %v275_v14 = vpop.permute.xlu0 %274 }
 0x14d   :  { %814 = vst.msk [vmem:[%s1153_s4 + $0x10] sm:$0xff] %vm112_vm3, %v275_v14  ;;  %894 = vmatprep.mubr.msk.f32.mxu1 %vm112_vm3, %v275_v14 }
 0x14f   :  { %v616_v15 = vpop.permute.xlu1 %615 }
 0x150   :  { %833 = vst.msk [vmem:[%s1153_s4 + $0x38] sm:$0xff] %vm112_vm3, %v616_v15  ;;  %v277_v16 = vpop.permute.xlu0 %276 }
 0x151   :  { %815 = vst.msk [vmem:[%s1153_s4 + $0x18] sm:$0xff] %vm112_vm3, %v277_v16  ;;  %v926_v17 = vpack.c.bf16 %v277_v16, %v275_v14  ;;  %895 = vmatmul.mubr.msk.f32.vlgmr.msra.gmra.mrb[2].mxu1 %vm112_vm3, %v277_v16 }
 0x152   :  { %901 = vmatprep.mubr.msk.f32.mxu1 %vm976_vm2, %v977_v5 }
 0x153   :  { %928 = vmatpush3.bf16.xpose.msk.msra.mxu0 %vm1040_vm4, %v926_v17 }
 0x154   :  { %v445_v18 = vpop.permute.xlu0 %444  ;;  %904 = vmatprep.subr.mxu0 %v533_v12 }
 0x155   :  { %823 = vst.msk [vmem:[%s1153_s4 + $0x20] sm:$0xff] %vm112_vm3, %v445_v18  ;;  %v930_v19 = vpack.c.bf16 %v447_v13, %v445_v18 }
 0x157   :  { %932 = vmatpush3.bf16.xpose.msk.msra.mxu1 %vm1040_vm4, %v930_v19 }
 0x158   :  { %v614_v21 = vpop.permute.xlu0 %613 }
 0x159   :  { %832 = vst.msk [vmem:[%s1153_s4 + $0x30] sm:$0xff] %vm112_vm3, %v614_v21  ;;  %v934_v24 = vpack.c.bf16 %v616_v15, %v614_v21 }
 0x15a   :  { %890 = vmatmul.mubr.msk.f32.vlgmr.msra.gmra.mrb[4].mxu0 %vm112_vm3, %v283_v20 }
 0x15b   :  { %905 = vmatpush3.msra.mxu0 %v533_v12  ;;  %906 = vmatprep.mubr.msk.f32.mxu0 %vm112_vm3, %v445_v18 }
 0x15c   :  { %v702_v23 = vpop.permute.xlu0 %701  ;;  %933 = vmatprep.subr.bf16.mxu0 %v975_v4 }
 0x15d   :  { %916 = vmatprep.subr.mxu1 %v702_v23 }
 0x15e   :  { %902 = vmatmul.mubr.msk.f32.vlgmr.msra.gmra.mrb[4].mxu1 %vm112_vm3, %v453_v22  ;;  %907 = vmatmul.mubr.msk.f32.vlgmr.msra.gmra.mrb[6].mxu0 %vm112_vm3, %v447_v13 }
 0x15f   :  { %918 = vmatprep.mubr.msk.f32.mxu1 %vm112_vm3, %v614_v21  ;;  %917 = vmatpush3.msra.mxu1 %v702_v23 }
 0x160   :  { %913 = vmatprep.mubr.msk.f32.mxu0 %vm976_vm2, %v977_v5 }
 0x162   :  { %936 = vmatpush3.bf16.xpose.msk.msra.mxu0 %vm1040_vm4, %v934_v24  ;;  %919 = vmatmul.mubr.msk.f32.vlgmr.msra.gmra.mrb[6].mxu1 %vm112_vm3, %v616_v15 }
 0x169   :  { %914 = vmatmul.mubr.msk.f32.vlgmr.msra.gmra.mrb[8].mxu0 %vm112_vm3, %v622_v25 }
 0x1ae   :  { %v884_v26 = vpop.f32.mrb[2].mxu0 }
 0x1af   :  { %273 = vst.msk [vmem:[%s1155_s6 + $0x8] sm:$0xff] %vm271_vm5, %v884_v26  ;;  %v262_v27 = vpop.f32.mrb[3].mxu0 }
 0x1b0   :  { %272 = vst.msk [vmem:[%s1155_s6] sm:$0xff] %vm271_vm5, %v262_v27 }
 0x1b6   :  { %v190_v28 = vpop.f32.mrb[0].mxu1 }
 0x1b7   :  { %195 = vst.msk [vmem:[#allocation2] sm:$0x1] %vm194_vm6, %v190_v28  ;;  %v879_v29 = vpop.f32.mrb[1].mxu1 }
 0x224   :  { %v896_v30 = vpop.f32.mrb[2].mxu1 }
 0x225   :  { %822 = vst.msk [vmem:[%s1155_s6 + $0x18] sm:$0xff] %vm271_vm5, %v896_v30  ;;  %v432_v31 = vpop.f32.mrb[3].mxu1 }
 0x226   :  { %821 = vst.msk [vmem:[%s1155_s6 + $0x10] sm:$0xff] %vm271_vm5, %v432_v31 }
 0x22d   :  { %v356_v32 = vpop.f32.mrb[4].mxu0 }
 0x22e   :  { %361 = vst.msk [vmem:[#allocation2 + $0x1] sm:$0x1] %vm194_vm6, %v356_v32  ;;  %v891_v33 = vpop.f32.mrb[5].mxu0 }
 0x231   :  { %v908_v34 = vpop.f32.mrb[6].mxu0  ;;  %v526_v35 = vpop.f32.mrb[4].mxu1 }
 0x232   :  { %831 = vst.msk [vmem:[%s1155_s6 + $0x28] sm:$0xff] %vm271_vm5, %v908_v34  ;;  %v601_v36 = vpop.f32.mrb[7].mxu0  ;;  %v903_v37 = vpop.f32.mrb[5].mxu1 }
 0x233   :  { %531 = vst.msk [vmem:[#allocation2 + $0x2] sm:$0x1] %vm194_vm6, %v526_v35 }
 0x234   :  { %830 = vst.msk [vmem:[%s1155_s6 + $0x20] sm:$0xff] %vm271_vm5, %v601_v36 }
 0x235   :  { %v920_v38 = vpop.f32.mrb[6].mxu1 }
 0x236   :  { %840 = vst.msk [vmem:[%s1155_s6 + $0x38] sm:$0xff] %vm271_vm5, %v920_v38  ;;  %v770_v39 = vpop.f32.mrb[7].mxu1 }
 0x237   :  { %839 = vst.msk [vmem:[%s1155_s6 + $0x30] sm:$0xff] %vm271_vm5, %v770_v39 }
 0x23c   :  { %v695_v40 = vpop.f32.mrb[8].mxu0 }
 0x23d   :  { %700 = vst.msk [vmem:[#allocation2 + $0x3] sm:$0x1] %vm194_vm6, %v695_v40  ;;  %v915_v41 = vpop.f32.mrb[9].mxu0 }
 0x23e   :  { %960 = shalt.err (!%p957_p4)
}
 0x23f   :  { %s961_s2 = scalar_lea.hbm %s1154_s5, 64 }
 0x240   :  { %p962_p5 = scmp.ne.s32.totalorder %s1154_s5, %s961_s2  ;;  %p965_p6 = scmp.lt.u32.totalorder %s961_s2, %s1154_s5 }
 0x242   :  { %p967_p7 = pnand %p965_p6, %p962_p5 }
 0x244   :  { %970 = shalt.err (!%p967_p7)
}
 0x245   :  { %s983_s21 = smov 16   ;;  %s984_s22 = smov 1  }
 0x246   :  { %795 = dma.vmem_to_hbm [thread:$0]  %s790_s14, 64, %s1154_s5, [#allocation3], %s983_s21, %s983_s21, %s984_s22  }
 0x247   :  { %971 = dma.done.wait [#allocation3], 64  }
 0x248   :  { %972 = vsyncadd [#allocation3], 4294967232 }
 0x249   :  { %805 = vsyncpa [#allocation3], 1 }

</bundles_post_ra>
